<compile_context>
chip_gen: v7x
topology: tpu7x:2x2x1
jax: 0.10.0
libtpu: 0.0.40
codegen_flags: <defaults>
</compile_context>

<pallas_src>
import functools

import jax
import jax.numpy as jnp
from jax import lax
from jax.experimental import pallas as pl
from jax.experimental.pallas import tpu as pltpu

_LANE = 128
_VMEM_LIMIT = 32 * 1024 * 1024  # safe on v5e (128 MiB), v6e (128 MiB), v7x (64 MiB)


# ------------------------------------------------------------------ kernel --
def _flat_diag_mask(shape, block_rows, nelec):
    """Boolean i==j mask for a (block_rows, 128) tile of the flattened tensor.

    Diagonal elements of one (N, N) matrix sit at flat offsets that are
    multiples of N+1, so:  diag  <=>  ((k mod N^2) mod (N+1)) == 0.
    """
    base = pl.program_id(0) * (block_rows * _LANE)
    row = lax.broadcasted_iota(jnp.int32, shape, 0)
    lane = lax.broadcasted_iota(jnp.int32, shape, 1)
    k = base + row * _LANE + lane                 # global flat index into (B, N, N)
    m = k % (nelec * nelec)                       # offset inside one (N, N) matrix
    return (m % (nelec + 1)) == 0


def _backflow_body(w_ref, r_ref, o_ref, *, derivative, nelec, block_rows):
    """One lane-dense tile of the flattened e-e distance tensor."""
    w = w_ref[0]
    r = r_ref[...].astype(jnp.float32)
    diag = _flat_diag_mask(r.shape, block_rows, nelec)

    one = jnp.float32(1.0)
    denom = jnp.where(diag, one, r)               # distance diagonal is 0 -> keep finite
    inv = one / denom

    if derivative == 0:
        val = w * (inv - one)
    elif derivative == 1:
        val = (-w) * (inv * inv)
    else:  # derivative == 2
        val = (2.0 * w) * (inv * inv * inv)

    o_ref[...] = jnp.where(diag, jnp.float32(0.0), val).astype(o_ref.dtype)


def _backflow_body_fused(w_ref, r_ref, o0_ref, o1_ref, o2_ref, *, nelec, block_rows):
    """Fused f / f' / f'' from a single HBM read of ree."""
    w = w_ref[0]
    r = r_ref[...].astype(jnp.float32)
    diag = _flat_diag_mask(r.shape, block_rows, nelec)

    one = jnp.float32(1.0)
    zero = jnp.float32(0.0)
    denom = jnp.where(diag, one, r)
    inv = one / denom
    inv2 = inv * inv

    o0_ref[...] = jnp.where(diag, zero, w * (inv - one)).astype(o0_ref.dtype)
    o1_ref[...] = jnp.where(diag, zero, (-w) * inv2).astype(o1_ref.dtype)
    o2_ref[...] = jnp.where(diag, zero, (2.0 * w) * (inv2 * inv)).astype(o2_ref.dtype)


# --------------------------------------------------------------- wrappers ---
def _prepare(ree, block_rows_req):
    """Present ree as a lane-dense (rows, 128) slab + pick the tile size.

    Fast path (n % 128 == 0): pure reshape, zero-copy.
    Fallback: pad only the ragged lane tail (single small copy).
    """
    nbatch, nelec, _ = ree.shape
    n = nbatch * nelec * nelec

    if n % _LANE == 0:
        rows = n // _LANE
        x2d = ree.reshape(rows, _LANE)            # free (contiguous) reshape
        padded = False
    else:
        rows = -(-n // _LANE)
        pad = rows * _LANE - n
        x2d = jnp.pad(ree.reshape(-1), (0, pad),
                      constant_values=1.0).reshape(rows, _LANE)
        padded = True

    if rows <= 8:
        br = rows                                 # single full-extent block
    else:
        half = -(-rows // 2)                      # >=2 blocks so both v7x TCs work
        br = max(8, min(block_rows_req, ((half + 7) // 8) * 8))
    grid0 = -(-rows // br)                        # ragged last tile handled by Pallas
    return x2d, br, grid0, n, padded


def backflow_kernel(ree, weight, derivative=0, block_rows=8192):
    """Pallas implementation of BackFlowKernel.forward(ree, derivative)."""
    if derivative not in (0, 1, 2):
        raise ValueError("derivative of the kernel must be 0, 1 or 2")

    nbatch, nelec, _ = ree.shape
    x2d, br, grid0, n, padded = _prepare(ree, block_rows)
    w = jnp.asarray(weight, dtype=jnp.float32).reshape(1)

    kernel = functools.partial(
        _backflow_body, derivative=derivative, nelec=nelec, block_rows=br)

    itemsize = jnp.dtype(ree.dtype).itemsize
    out2d = pl.pallas_call(
        kernel,
        out_shape=jax.ShapeDtypeStruct(x2d.shape, ree.dtype),
        grid=(grid0,),
        in_specs=[
            pl.BlockSpec(memory_space=pltpu.MemorySpace.SMEM),   # weight scalar
            pl.BlockSpec((br, _LANE), lambda b: (b, 0)),         # ree slab
        ],
        out_specs=pl.BlockSpec((br, _LANE), lambda b: (b, 0)),
        compiler_params=pltpu.CompilerParams(
            dimension_semantics=("parallel",),
            vmem_limit_bytes=_VMEM_LIMIT),
        cost_estimate=pl.CostEstimate(
            flops=12 * x2d.size, transcendentals=0,
            bytes_accessed=2 * x2d.size * itemsize),
    )(w, x2d)

    if padded:
        return out2d.reshape(-1)[:n].reshape(nbatch, nelec, nelec)
    return out2d.reshape(nbatch, nelec, nelec)    # free reshape, no copy


def backflow_kernel_all(ree, weight, block_rows=4096):
    """Fused variant: returns (f, f', f'') with a single read of ree."""
    nbatch, nelec, _ = ree.shape
    x2d, br, grid0, n, padded = _prepare(ree, block_rows)
    w = jnp.asarray(weight, dtype=jnp.float32).reshape(1)

    kernel = functools.partial(_backflow_body_fused, nelec=nelec, block_rows=br)
    slab = jax.ShapeDtypeStruct(x2d.shape, ree.dtype)
    spec = pl.BlockSpec((br, _LANE), lambda b: (b, 0))
    itemsize = jnp.dtype(ree.dtype).itemsize

    outs = pl.pallas_call(
        kernel,
        out_shape=(slab, slab, slab),
        grid=(grid0,),
        in_specs=[
            pl.BlockSpec(memory_space=pltpu.MemorySpace.SMEM),
            spec,
        ],
        out_specs=(spec, spec, spec),
        compiler_params=pltpu.CompilerParams(
            dimension_semantics=("parallel",),
            vmem_limit_bytes=_VMEM_LIMIT),
        cost_estimate=pl.CostEstimate(
            flops=16 * x2d.size, transcendentals=0,
            bytes_accessed=4 * x2d.size * itemsize),
    )(w, x2d)

    if padded:
        return tuple(o.reshape(-1)[:n].reshape(nbatch, nelec, nelec) for o in outs)
    return tuple(o.reshape(nbatch, nelec, nelec) for o in outs)


# ---------------------------------------------------------------- reference --
def _ref_f(ree, weight):
    nelec = ree.shape[-1]
    eye = jnp.eye(nelec, dtype=ree.dtype)
    mask = 1.0 - eye
    return weight * mask * (1.0 / (ree + eye) - 1.0)


def _ref_forward(ree, weight, derivative):
    """Pure-JAX reference using autodiff, mirroring the torch base class."""
    if derivative == 0:
        return _ref_f(ree, weight)
    f = lambda r: jnp.sum(_ref_f(r, weight))      # ones cotangent == grad of sum
    if derivative == 1:
        return jax.grad(f)(ree)
    g = lambda r: jnp.sum(jax.grad(f)(r))
    return jax.grad(g)(ree)


def _make_ree(key, nbatch, nelec):
    """Genuine e-e distance matrix: symmetric, exact-zero diagonal."""
    pos = jax.random.normal(key, (nbatch, nelec, 3), dtype=jnp.float32)
    diff = pos[:, :, None, :] - pos[:, None, :, :]
    ree = jnp.sqrt(jnp.sum(diff * diff, axis=-1) + 1e-12)
    return ree * (1.0 - jnp.eye(nelec, dtype=ree.dtype))


if __name__ == "__main__":
    key = jax.random.PRNGKey(0)
    weight = 1e-4  # deterministic parameter init (nn.Parameter([1e-4]))
    ok = True

    # (nbatch, nelec, block_rows override) — covers the zero-copy fast path,
    # the multi-tile path (2 lane-dense tiles, diag crossing tiles) and the
    # padded fallback (n % 128 != 0).
    cases = [(2, 8, 8192), (8, 32, 8192), (3, 7, 8192)]
    keys = jax.random.split(key, len(cases))

    for (nbatch, nelec, br), k in zip(cases, keys):
        ree = _make_ree(k, nbatch, nelec)
        for deriv in (0, 1, 2):
            out = jax.block_until_ready(
                backflow_kernel(ree, weight, derivative=deriv, block_rows=br))
            ref = _ref_forward(ree, jnp.float32(weight), deriv)
            ok = ok and bool(jnp.allclose(out, ref, rtol=1e-5, atol=1e-6))

        # Fused variant: one HBM read, three outputs.
        fused = jax.block_until_ready(backflow_kernel_all(ree, weight))
        for deriv, fval in zip((0, 1, 2), fused):
            ref = _ref_forward(ree, jnp.float32(weight), deriv)
            ok = ok and bool(jnp.allclose(fval, ref, rtol=1e-5, atol=1e-6))

    if ok:
        print("KERNEL_OK")
    else:
        print("KERNEL_MISMATCH")
</pallas_src>

<mosaic_0001>
module attributes {stable_mosaic.version = 11 : i64} {
  func.func @_backflow_body(%arg0: i32, %arg1: memref<1xf32, #tpu.memory_space<smem>>, %arg2: memref<1x128xf32, #tpu.memory_space<vmem>>, %arg3: memref<1x128xf32, #tpu.memory_space<vmem>>) attributes {dimension_semantics = [#tpu.dimension_semantics<parallel>], iteration_bounds = array<i64: 1>, scalar_prefetch = 0 : i64, scratch_operands = 0 : i64, tpu.core_type = #tpu.core_type<tc>, window_params = [{transform_indices = @transform_0, window_bounds = array<i64: 1>}, {transform_indices = @transform_1, window_bounds = array<i64: 1, 128>}, {transform_indices = @transform_2, window_bounds = array<i64: 1, 128>}]} {
    %c0 = arith.constant 0 : index
    %0 = memref.load %arg1[%c0] : memref<1xf32, #tpu.memory_space<smem>>
    %c0_0 = arith.constant 0 : index
    %c0_1 = arith.constant 0 : index
    %1 = vector.load %arg2[%c0_0, %c0_1] : memref<1x128xf32, #tpu.memory_space<vmem>>, vector<1x128xf32>
    %c128_i32 = arith.constant 128 : i32
    %2 = arith.muli %arg0, %c128_i32 : i32
    %3 = tpu.iota {dimensions = array<i32: 0>} : vector<1x128xi32>
    %4 = tpu.iota {dimensions = array<i32: 1>} : vector<1x128xi32>
    %c128_i32_2 = arith.constant 128 : i32
    %5 = vector.broadcast %c128_i32_2 : i32 to vector<1x128xi32>
    %6 = arith.muli %3, %5 : vector<1x128xi32>
    %7 = vector.broadcast %2 : i32 to vector<1x128xi32>
    %8 = arith.addi %7, %6 : vector<1x128xi32>
    %9 = arith.addi %8, %4 : vector<1x128xi32>
    %c64_i32 = arith.constant 64 : i32
    %c0_i32 = arith.constant 0 : i32
    %10 = arith.cmpi eq, %c64_i32, %c0_i32 : i32
    %c1_i32 = arith.constant 1 : i32
    %11 = arith.select %10, %c1_i32, %c64_i32 : i32
    %12 = vector.broadcast %11 : i32 to vector<1x128xi32>
    %13 = arith.remsi %9, %12 : vector<1x128xi32>
    %c0_i32_3 = arith.constant 0 : i32
    %14 = vector.broadcast %c0_i32_3 : i32 to vector<1x128xi32>
    %15 = arith.cmpi ne, %13, %14 : vector<1x128xi32>
    %c0_i32_4 = arith.constant 0 : i32
    %16 = vector.broadcast %c0_i32_4 : i32 to vector<1x128xi32>
    %17 = arith.cmpi slt, %13, %16 : vector<1x128xi32>
    %c0_i32_5 = arith.constant 0 : i32
    %18 = arith.cmpi slt, %11, %c0_i32_5 : i32
    %19 = vector.broadcast %18 : i1 to vector<1x128xi1>
    %20 = vector.broadcast %19 : vector<1x128xi1> to vector<1x128xi1>
    %21 = arith.xori %17, %20 : vector<1x128xi1>
    %22 = arith.andi %21, %15 : vector<1x128xi1>
    %23 = vector.broadcast %11 : i32 to vector<1x128xi32>
    %24 = arith.addi %13, %23 : vector<1x128xi32>
    %25 = arith.select %22, %24, %13 : vector<1x128xi1>, vector<1x128xi32>
    %c9_i32 = arith.constant 9 : i32
    %c0_i32_6 = arith.constant 0 : i32
    %26 = arith.cmpi eq, %c9_i32, %c0_i32_6 : i32
    %c1_i32_7 = arith.constant 1 : i32
    %27 = arith.select %26, %c1_i32_7, %c9_i32 : i32
    %28 = vector.broadcast %27 : i32 to vector<1x128xi32>
    %29 = arith.remsi %25, %28 : vector<1x128xi32>
    %c0_i32_8 = arith.constant 0 : i32
    %30 = vector.broadcast %c0_i32_8 : i32 to vector<1x128xi32>
    %31 = arith.cmpi ne, %29, %30 : vector<1x128xi32>
    %c0_i32_9 = arith.constant 0 : i32
    %32 = vector.broadcast %c0_i32_9 : i32 to vector<1x128xi32>
    %33 = arith.cmpi slt, %29, %32 : vector<1x128xi32>
    %c0_i32_10 = arith.constant 0 : i32
    %34 = arith.cmpi slt, %27, %c0_i32_10 : i32
    %35 = vector.broadcast %34 : i1 to vector<1x128xi1>
    %36 = vector.broadcast %35 : vector<1x128xi1> to vector<1x128xi1>
    %37 = arith.xori %33, %36 : vector<1x128xi1>
    %38 = arith.andi %37, %31 : vector<1x128xi1>
    %39 = vector.broadcast %27 : i32 to vector<1x128xi32>
    %40 = arith.addi %29, %39 : vector<1x128xi32>
    %41 = arith.select %38, %40, %29 : vector<1x128xi1>, vector<1x128xi32>
    %c0_i32_11 = arith.constant 0 : i32
    %42 = vector.broadcast %c0_i32_11 : i32 to vector<1x128xi32>
    %43 = arith.cmpi eq, %41, %42 : vector<1x128xi32>
    %cst = arith.constant 1.000000e+00 : f32
    %44 = vector.broadcast %cst : f32 to vector<1x128xf32>
    %45 = arith.select %43, %44, %1 : vector<1x128xi1>, vector<1x128xf32>
    %cst_12 = arith.constant 1.000000e+00 : f32
    %46 = vector.broadcast %cst_12 : f32 to vector<1x128xf32>
    %47 = arith.divf %46, %45 : vector<1x128xf32>
    %cst_13 = arith.constant 1.000000e+00 : f32
    %48 = vector.broadcast %cst_13 : f32 to vector<1x128xf32>
    %49 = arith.subf %47, %48 : vector<1x128xf32>
    %50 = vector.broadcast %0 : f32 to vector<1x128xf32>
    %51 = arith.mulf %50, %49 : vector<1x128xf32>
    %cst_14 = arith.constant 0.000000e+00 : f32
    %52 = vector.broadcast %cst_14 : f32 to vector<1x128xf32>
    %53 = arith.select %43, %52, %51 : vector<1x128xi1>, vector<1x128xf32>
    %c0_15 = arith.constant 0 : index
    %c0_16 = arith.constant 0 : index
    %54 = vector.load %arg3[%c0_15, %c0_16] : memref<1x128xf32, #tpu.memory_space<vmem>>, vector<1x128xf32>
    tpu.vector_store %arg3[%c0_15, %c0_16], %53 {strides = array<i32>} : memref<1x128xf32, #tpu.memory_space<vmem>>, vector<1x128xf32>,
    return
  }
  func.func @transform_0(%arg0: i32) -> i32 {
    %c0_i32 = arith.constant 0 : i32
    %c0_i32_0 = arith.constant 0 : i32
    return %c0_i32 : i32
  }
  func.func @transform_1(%arg0: i32) -> (i32, i32) {
    %c0_i32 = arith.constant 0 : i32
    %c0_i32_0 = arith.constant 0 : i32
    return %arg0, %c0_i32 : i32, i32
  }
  func.func @transform_2(%arg0: i32) -> (i32, i32) {
    %c0_i32 = arith.constant 0 : i32
    %c0_i32_0 = arith.constant 0 : i32
    return %arg0, %c0_i32 : i32, i32
  }
}

</mosaic_0001>

<bundles_post_ra>
// kernel: tpu_custom_call.1
= control target key start
LH: loop header
LB: loop body
LE: loop exit
PB: predicated region body
PF: predicated region fallthrough
CT: control target
= control target key end

     0   :  { %v16_v0 = vlaneseq  ;;  %s145_s0 = inlined_call_operand.<no memory space> [shape: f32[1], index: 0, kind: input, shape index: {}]   ;;  %s146_s1 = inlined_call_operand.vmem [shape: f32[1,128], index: 1, kind: input, shape index: {}]   ;;  %s147_s2 = inlined_call_operand.hbm [shape: f32[1,128], index: 2, kind: output, shape index: {}]  }
   0x1   :  { %8 = vsyncpa [#allocation4], 0  ;;  %v14_v22 = vld [vmem:[%s146_s1] sm:$0x1]  ;;  %v57_v26 = vstv %s145_s0  ;;  %s107_s13 = smov [#allocation3]  }
   0x2   :  { %v17_v1 = vshrl.u32 %v16_v0, 7  ;;  %v19_v2 = vand.u32 127, %v16_v0  ;;  %s67_s14 = sshll.u32 %s107_s13, 4  ;;  %s68_s14 = int_to_ptr.vmem [resolvable:$true] %s67_s14 }
   0x3   :  { %s83_s15 = scalar_lea.vmem %s68_s14, 16  ;;  %s87_s1 = scalar_lea.vmem %s68_s14, 32 }
   0x4   :  { %v20_v3 = vmul.u32 128, %v17_v1  ;;  %p84_p0 = scmp.ne.s32.totalorder %s68_s14, %s83_s15  ;;  %p88_p1 = scmp.lt.s32.totalorder %s68_s14, %s68_s14 }
   0x5   :  { %p89_p2 = scmp.lt.s32.totalorder %s87_s1, %s83_s15 }
   0x6   :  { %v23_v4 = vadd.s32 %v20_v3, %v19_v2 }
   0x7   :  { %p90_p3 = por %p89_p2, %p88_p1 }
   0x8   :  { %v25_v5 = vsub.s32 0, %v23_v4  ;;  %vm24_vm0 = vcmp.lt.s32.totalorder %v23_v4, 0 }
   0x9   :  { %p91_p4 = pnand %p90_p3, %p84_p0 }
   0xa   :  { %v75_v6 = vmin.u32 %v25_v5, %v23_v4 }
   0xc   :  { %v28_v7 = vand.u32 63, %v75_v6 }
   0xe   :  { %v29_v8 = vsub.s32 0, %v28_v7 }
  0x10   :  { %v30_v9 = vsel %vm24_vm0, %v29_v8, %v28_v7 }
  0x11   :  { %vm31_vm1 = vcmp.ne.s32.totalorder %v30_v9, 0  ;;  %vm32_vm2 = vcmp.lt.s32.totalorder %v30_v9, 0  ;;  %v34_v10 = vadd.s32 64, %v30_v9 }
  0x12   :  { %vm33_vm3 = vmand %vm32_vm2, %vm31_vm1 }
  0x13   :  { %v35_v11 = vsel %vm33_vm3, %v34_v10, %v30_v9 }
  0x14   :  { %v37_v12 = vsub.s32 0, %v35_v11  ;;  %vm36_vm4 = vcmp.lt.s32.totalorder %v35_v11, 0 }
  0x16   :  { %v76_v13 = vmin.u32 %v37_v12, %v35_v11 }
  0x18   :  { %v123_v14 = vmul.u32.u64.low 3817748708, %v76_v13  ;;  %v124_v15 = vmul.u32.u64.high 3817748708, %v76_v13, %v123_v14 }
  0x1a   :  { %v42_v16 = vshrl.u32 %v124_v15, 3 }
  0x1c   :  { %v43_v17 = vmul.u32 9, %v42_v16 }
  0x1e   :  { %v44_v18 = vsub.s32 %v76_v13, %v43_v17 }
  0x20   :  { %v45_v19 = vsub.s32 0, %v44_v18 }
  0x22   :  { %v46_v20 = vsel %vm36_vm4, %v45_v19, %v44_v18 }
  0x23   :  { %vm47_vm5 = vcmp.ne.s32.totalorder %v46_v20, 0  ;;  %vm48_vm6 = vcmp.lt.s32.totalorder %v46_v20, 0  ;;  %v50_v21 = vadd.s32 9, %v46_v20 }
  0x24   :  { %vm49_vm7 = vmand %vm48_vm6, %vm47_vm5 }
  0x25   :  { %v51_v23 = vsel %vm49_vm7, %v50_v21, %v46_v20 }
  0x26   :  { %vm52_vm8 = vcmp.eq.s32.totalorder %v51_v23, 0 }
  0x27   :  { %v53_v24 = vsel %vm52_vm8, 1.0, %v14_v22 }
  0x28   :  { %81 = vrcp.f32 %v53_v24 }
  0x32   :  { %v82_v25 = vpop.eup %81 }
  0x33   :  { %v77_v27 = vadd.f32 -1.0, %v82_v25 }
  0x35   :  { %v58_v28 = vmul.f32 %v77_v27, %v57_v26 }
  0x37   :  { %v59_v29 = vsel %vm52_vm8, 0.0, %v58_v28 }
  0x38   :  { %60 = vst [vmem:[#allocation3] sm:$0x1] %v59_v29 }
  0x39   :  { %94 = shalt.err (!%p91_p4)
}
  0x3a   :  { %s95_s18 = scalar_lea.hbm %s147_s2, 16 }
  0x3b   :  { %p96_p5 = scmp.ne.s32.totalorder %s147_s2, %s95_s18  ;;  %p99_p6 = scmp.lt.u32.totalorder %s95_s18, %s147_s2 }
  0x3d   :  { %p101_p7 = pnand %p99_p6, %p96_p5 }
  0x3f   :  { %104 = shalt.err (!%p101_p7)
}
  0x40   :  { %70 = dma.vmem_to_hbm [thread:$0]  %s68_s14, 16, %s147_s2, [#allocation4]  }
  0x41   :  { %105 = dma.done.wait [#allocation4], 16  }
  0x42   :  { %106 = vsyncadd [#allocation4], 4294967280 }
  0x43   :  { %74 = vsyncpa [#allocation4], 1 }

</bundles_post_ra>
